<compile_context>
chip_gen: v7x
topology: tpu7x:2x2x1
jax: 0.10.0
libtpu: 0.0.40
codegen_flags: <defaults>
</compile_context>

<pallas_src>
import jax
import jax.numpy as jnp
from jax import lax
from jax.experimental import pallas as pl
from jax.experimental.pallas import tpu as pltpu


# ---- flat parameter-slab layout (f32, 64 entries, 47 used) -----------------
W1_OFF, B1_OFF = 0, 20     # w1: (5,4) row-major, b1: (5,)
W2_OFF, B2_OFF = 25, 40    # w2: (3,5) row-major, b2: (3,)
W3_OFF, B3_OFF = 43, 46    # w3: (1,3) row-major, b3: (1,)
PARAM_SLAB = 64

LANE_CHUNK = 256           # lanes per inner compute chunk (2 vregs per slab)


def _round_up(x, m):
    return ((x + m - 1) // m) * m


def _sigmoid(h):
    # exact sigmoid with a single EUP op (tanh); VPU handles the scale/shift.
    return 0.5 * jnp.tanh(0.5 * h) + 0.5


def simple_nn_kernel(p_ref, x_ref, o_ref):
    # p_ref: (PARAM_SLAB,) f32 in SMEM  -- resident for the whole call
    # x_ref: (4, 8, C)     f32 in VMEM  -- feature f is the full (8, C) slab x_ref[f]
    # o_ref: (8, C)        f32 in VMEM  -- lane-dense output slab
    c_total = x_ref.shape[2]
    chunk = LANE_CHUNK if c_total % LANE_CHUNK == 0 else 128
    n_chunks = c_total // chunk

    # Hoist all 47 parameter scalar reads out of the chunk loop.
    w1 = [[p_ref[W1_OFF + o * 4 + i] for i in range(4)] for o in range(5)]
    b1 = [p_ref[B1_OFF + o] for o in range(5)]
    w2 = [[p_ref[W2_OFF + o * 5 + i] for i in range(5)] for o in range(3)]
    b2 = [p_ref[B2_OFF + o] for o in range(3)]
    w3 = [p_ref[W3_OFF + i] for i in range(3)]
    b3 = p_ref[B3_OFF]

    def body(step, carry):
        c0 = pl.multiple_of(step * chunk, chunk)
        x = [x_ref[f, :, pl.ds(c0, chunk)] for f in range(4)]   # 4 x (8, chunk)

        # ---- layer 1: 4 -> 5, ReLU (unrolled VPU broadcast-FMA) ------------
        y1 = []
        for o in range(5):
            h = w1[o][0] * x[0]
            for i in range(1, 4):
                h = h + w1[o][i] * x[i]
            y1.append(jnp.maximum(h + b1[o], 0.0))

        # ---- layer 2: 5 -> 3, Sigmoid --------------------------------------
        y2 = []
        for o in range(3):
            h = w2[o][0] * y1[0]
            for i in range(1, 5):
                h = h + w2[o][i] * y1[i]
            y2.append(_sigmoid(h + b2[o]))

        # ---- layer 3: 3 -> 1, Sigmoid --------------------------------------
        h = w3[0] * y2[0] + w3[1] * y2[1] + w3[2] * y2[2] + b3
        o_ref[:, pl.ds(c0, chunk)] = _sigmoid(h).astype(o_ref.dtype)
        return carry

    lax.fori_loop(0, n_chunks, body, 0)


def pack_params(w1, b1, w2, b2, w3, b3):
    """Pack PyTorch-layout params (w: (out,in), b: (out,)) into one f32 slab."""
    p = jnp.zeros((PARAM_SLAB,), jnp.float32)
    p = p.at[W1_OFF:W1_OFF + 20].set(w1.reshape(-1).astype(jnp.float32))
    p = p.at[B1_OFF:B1_OFF + 5].set(b1.reshape(-1).astype(jnp.float32))
    p = p.at[W2_OFF:W2_OFF + 15].set(w2.reshape(-1).astype(jnp.float32))
    p = p.at[B2_OFF:B2_OFF + 3].set(b2.reshape(-1).astype(jnp.float32))
    p = p.at[W3_OFF:W3_OFF + 3].set(w3.reshape(-1).astype(jnp.float32))
    p = p.at[B3_OFF:B3_OFF + 1].set(b3.reshape(-1).astype(jnp.float32))
    return p


def simple_nn_forward(x, w1, b1, w2, b2, w3, b3, *, max_batch_tile=131072):
    """x: (batch, 4) f32; weights in PyTorch layout (out, in); biases (out,)."""
    batch, in_dim = x.shape
    assert in_dim == 4

    params = pack_params(w1, b1, w2, b2, w3, b3)

    # Batch tile: multiple of 1024 (so the lane dim C = tb/8 is a multiple of
    # 128). Large default (128K) amortizes per-grid-step overhead while the
    # per-step VMEM footprint stays ~5 MiB with double-buffering (safe on
    # v5e/v6e/v7x default scoped VMEM).
    tb_full = _round_up(batch, 1024)
    tb = min(_round_up(max_batch_tile, 1024), tb_full)
    # Prefer >=2 tiles when there's enough work, so the "parallel" grid axis
    # can feed both v7x TensorCores (harmless on v5e/v6e).
    if tb == tb_full and tb >= 4096:
        tb = _round_up(tb_full // 2, 1024)
    batch_padded = _round_up(batch, tb)
    num_tiles = batch_padded // tb
    lanes = tb // 8  # C

    # Feature-major, full-sublane layout with NO extra feature padding:
    #   x3[f, t*8 + s, c] = x[t*tb + s*C + c, f]
    x_t = x.T.astype(jnp.float32)                       # (4, batch)
    pad = batch_padded - batch
    if pad:
        x_t = jnp.pad(x_t, ((0, 0), (0, pad)))
    x3 = x_t.reshape(4, num_tiles * 8, lanes)

    out_fm = pl.pallas_call(
        simple_nn_kernel,
        out_shape=jax.ShapeDtypeStruct((num_tiles * 8, lanes), jnp.float32),
        grid=(num_tiles,),
        in_specs=[
            # one tiny parameter slab, resident in SMEM for the whole call
            pl.BlockSpec(memory_space=pltpu.MemorySpace.SMEM),
            # streamed, lane-dense, full-sublane activation tiles
            pl.BlockSpec((4, 8, lanes), lambda j: (0, j, 0)),
        ],
        out_specs=pl.BlockSpec((8, lanes), lambda j: (j, 0)),
        compiler_params=pltpu.CompilerParams(
            dimension_semantics=("parallel",),
        ),
    )(params, x3)

    # back to the PyTorch-facing (batch, 1) layout (same batch mapping)
    return out_fm.reshape(-1)[:batch].reshape(batch, 1)


def init_linear_params(key, in_dim, out_dim):
    """Deterministic init mimicking torch.nn.Linear (uniform +/- 1/sqrt(in))."""
    k_w, k_b = jax.random.split(key)
    bound = 1.0 / jnp.sqrt(jnp.float32(in_dim))
    w = jax.random.uniform(k_w, (out_dim, in_dim), jnp.float32, -bound, bound)
    b = jax.random.uniform(k_b, (out_dim,), jnp.float32, -bound, bound)
    return w, b


if __name__ == "__main__":
    key = jax.random.PRNGKey(0)
    k_x, k1, k2, k3 = jax.random.split(key, 4)

    input_dim = 4
    batch = 2

    x = jax.random.normal(k_x, (batch, input_dim), jnp.float32)

    w1, b1 = init_linear_params(k1, input_dim, 5)
    w2, b2 = init_linear_params(k2, 5, 3)
    w3, b3 = init_linear_params(k3, 3, 1)

    out = simple_nn_forward(x, w1, b1, w2, b2, w3, b3)
    out = jax.block_until_ready(out)

    # pure-JAX reference (matches the PyTorch forward exactly)
    y1 = jnp.maximum(x @ w1.T + b1, 0.0)
    y2 = jax.nn.sigmoid(y1 @ w2.T + b2)
    ref = jax.nn.sigmoid(y2 @ w3.T + b3)
    assert out.shape == (batch, 1)
    assert jnp.allclose(out, ref, atol=1e-5, rtol=1e-5)

    print("KERNEL_OK")
</pallas_src>

<mosaic_0001>
module attributes {stable_mosaic.version = 11 : i64} {
  func.func @simple_nn_kernel(%arg0: i32, %arg1: memref<64xf32, #tpu.memory_space<smem>>, %arg2: memref<4x8x128xf32, #tpu.memory_space<vmem>>, %arg3: memref<8x128xf32, #tpu.memory_space<vmem>>) attributes {dimension_semantics = [#tpu.dimension_semantics<parallel>], iteration_bounds = array<i64: 1>, scalar_prefetch = 0 : i64, scratch_operands = 0 : i64, tpu.core_type = #tpu.core_type<tc>, window_params = [{transform_indices = @transform_0, window_bounds = array<i64: 64>}, {transform_indices = @transform_1, window_bounds = array<i64: 4, 8, 128>}, {transform_indices = @transform_2, window_bounds = array<i64: 8, 128>}]} {
    %c0 = arith.constant 0 : index
    %0 = memref.load %arg1[%c0] : memref<64xf32, #tpu.memory_space<smem>>
    %c1 = arith.constant 1 : index
    %1 = memref.load %arg1[%c1] : memref<64xf32, #tpu.memory_space<smem>>
    %c2 = arith.constant 2 : index
    %2 = memref.load %arg1[%c2] : memref<64xf32, #tpu.memory_space<smem>>
    %c3 = arith.constant 3 : index
    %3 = memref.load %arg1[%c3] : memref<64xf32, #tpu.memory_space<smem>>
    %c4 = arith.constant 4 : index
    %4 = memref.load %arg1[%c4] : memref<64xf32, #tpu.memory_space<smem>>
    %c5 = arith.constant 5 : index
    %5 = memref.load %arg1[%c5] : memref<64xf32, #tpu.memory_space<smem>>
    %c6 = arith.constant 6 : index
    %6 = memref.load %arg1[%c6] : memref<64xf32, #tpu.memory_space<smem>>
    %c7 = arith.constant 7 : index
    %7 = memref.load %arg1[%c7] : memref<64xf32, #tpu.memory_space<smem>>
    %c8 = arith.constant 8 : index
    %8 = memref.load %arg1[%c8] : memref<64xf32, #tpu.memory_space<smem>>
    %c9 = arith.constant 9 : index
    %9 = memref.load %arg1[%c9] : memref<64xf32, #tpu.memory_space<smem>>
    %c10 = arith.constant 10 : index
    %10 = memref.load %arg1[%c10] : memref<64xf32, #tpu.memory_space<smem>>
    %c11 = arith.constant 11 : index
    %11 = memref.load %arg1[%c11] : memref<64xf32, #tpu.memory_space<smem>>
    %c12 = arith.constant 12 : index
    %12 = memref.load %arg1[%c12] : memref<64xf32, #tpu.memory_space<smem>>
    %c13 = arith.constant 13 : index
    %13 = memref.load %arg1[%c13] : memref<64xf32, #tpu.memory_space<smem>>
    %c14 = arith.constant 14 : index
    %14 = memref.load %arg1[%c14] : memref<64xf32, #tpu.memory_space<smem>>
    %c15 = arith.constant 15 : index
    %15 = memref.load %arg1[%c15] : memref<64xf32, #tpu.memory_space<smem>>
    %c16 = arith.constant 16 : index
    %16 = memref.load %arg1[%c16] : memref<64xf32, #tpu.memory_space<smem>>
    %c17 = arith.constant 17 : index
    %17 = memref.load %arg1[%c17] : memref<64xf32, #tpu.memory_space<smem>>
    %c18 = arith.constant 18 : index
    %18 = memref.load %arg1[%c18] : memref<64xf32, #tpu.memory_space<smem>>
    %c19 = arith.constant 19 : index
    %19 = memref.load %arg1[%c19] : memref<64xf32, #tpu.memory_space<smem>>
    %c20 = arith.constant 20 : index
    %20 = memref.load %arg1[%c20] : memref<64xf32, #tpu.memory_space<smem>>
    %c21 = arith.constant 21 : index
    %21 = memref.load %arg1[%c21] : memref<64xf32, #tpu.memory_space<smem>>
    %c22 = arith.constant 22 : index
    %22 = memref.load %arg1[%c22] : memref<64xf32, #tpu.memory_space<smem>>
    %c23 = arith.constant 23 : index
    %23 = memref.load %arg1[%c23] : memref<64xf32, #tpu.memory_space<smem>>
    %c24 = arith.constant 24 : index
    %24 = memref.load %arg1[%c24] : memref<64xf32, #tpu.memory_space<smem>>
    %c25 = arith.constant 25 : index
    %25 = memref.load %arg1[%c25] : memref<64xf32, #tpu.memory_space<smem>>
    %c26 = arith.constant 26 : index
    %26 = memref.load %arg1[%c26] : memref<64xf32, #tpu.memory_space<smem>>
    %c27 = arith.constant 27 : index
    %27 = memref.load %arg1[%c27] : memref<64xf32, #tpu.memory_space<smem>>
    %c28 = arith.constant 28 : index
    %28 = memref.load %arg1[%c28] : memref<64xf32, #tpu.memory_space<smem>>
    %c29 = arith.constant 29 : index
    %29 = memref.load %arg1[%c29] : memref<64xf32, #tpu.memory_space<smem>>
    %c30 = arith.constant 30 : index
    %30 = memref.load %arg1[%c30] : memref<64xf32, #tpu.memory_space<smem>>
    %c31 = arith.constant 31 : index
    %31 = memref.load %arg1[%c31] : memref<64xf32, #tpu.memory_space<smem>>
    %c32 = arith.constant 32 : index
    %32 = memref.load %arg1[%c32] : memref<64xf32, #tpu.memory_space<smem>>
    %c33 = arith.constant 33 : index
    %33 = memref.load %arg1[%c33] : memref<64xf32, #tpu.memory_space<smem>>
    %c34 = arith.constant 34 : index
    %34 = memref.load %arg1[%c34] : memref<64xf32, #tpu.memory_space<smem>>
    %c35 = arith.constant 35 : index
    %35 = memref.load %arg1[%c35] : memref<64xf32, #tpu.memory_space<smem>>
    %c36 = arith.constant 36 : index
    %36 = memref.load %arg1[%c36] : memref<64xf32, #tpu.memory_space<smem>>
    %c37 = arith.constant 37 : index
    %37 = memref.load %arg1[%c37] : memref<64xf32, #tpu.memory_space<smem>>
    %c38 = arith.constant 38 : index
    %38 = memref.load %arg1[%c38] : memref<64xf32, #tpu.memory_space<smem>>
    %c39 = arith.constant 39 : index
    %39 = memref.load %arg1[%c39] : memref<64xf32, #tpu.memory_space<smem>>
    %c40 = arith.constant 40 : index
    %40 = memref.load %arg1[%c40] : memref<64xf32, #tpu.memory_space<smem>>
    %c41 = arith.constant 41 : index
    %41 = memref.load %arg1[%c41] : memref<64xf32, #tpu.memory_space<smem>>
    %c42 = arith.constant 42 : index
    %42 = memref.load %arg1[%c42] : memref<64xf32, #tpu.memory_space<smem>>
    %c43 = arith.constant 43 : index
    %43 = memref.load %arg1[%c43] : memref<64xf32, #tpu.memory_space<smem>>
    %c44 = arith.constant 44 : index
    %44 = memref.load %arg1[%c44] : memref<64xf32, #tpu.memory_space<smem>>
    %c45 = arith.constant 45 : index
    %45 = memref.load %arg1[%c45] : memref<64xf32, #tpu.memory_space<smem>>
    %c46 = arith.constant 46 : index
    %46 = memref.load %arg1[%c46] : memref<64xf32, #tpu.memory_space<smem>>
    %c0_i32 = arith.constant 0 : i32
    %c128_i32 = arith.constant 128 : i32
    %47 = arith.muli %c0_i32, %c128_i32 : i32
    %48 = tpu.assume_multiple %47, 128 : i32
    %c0_0 = arith.constant 0 : index
    %c0_1 = arith.constant 0 : index
    %49 = arith.index_cast %48 : i32 to index
    %50 = vector.load %arg2[%c0_0, %c0_1, %49] : memref<4x8x128xf32, #tpu.memory_space<vmem>>, vector<1x8x128xf32>
    %51 = vector.shape_cast %50 : vector<1x8x128xf32> to vector<8x128xf32>
    %c1_2 = arith.constant 1 : index
    %c0_3 = arith.constant 0 : index
    %52 = arith.index_cast %48 : i32 to index
    %53 = vector.load %arg2[%c1_2, %c0_3, %52] : memref<4x8x128xf32, #tpu.memory_space<vmem>>, vector<1x8x128xf32>
    %54 = vector.shape_cast %53 : vector<1x8x128xf32> to vector<8x128xf32>
    %c2_4 = arith.constant 2 : index
    %c0_5 = arith.constant 0 : index
    %55 = arith.index_cast %48 : i32 to index
    %56 = vector.load %arg2[%c2_4, %c0_5, %55] : memref<4x8x128xf32, #tpu.memory_space<vmem>>, vector<1x8x128xf32>
    %57 = vector.shape_cast %56 : vector<1x8x128xf32> to vector<8x128xf32>
    %c3_6 = arith.constant 3 : index
    %c0_7 = arith.constant 0 : index
    %58 = arith.index_cast %48 : i32 to index
    %59 = vector.load %arg2[%c3_6, %c0_7, %58] : memref<4x8x128xf32, #tpu.memory_space<vmem>>, vector<1x8x128xf32>
    %60 = vector.shape_cast %59 : vector<1x8x128xf32> to vector<8x128xf32>
    %61 = vector.broadcast %0 : f32 to vector<8x128xf32>
    %62 = arith.mulf %61, %51 : vector<8x128xf32>
    %63 = vector.broadcast %1 : f32 to vector<8x128xf32>
    %64 = arith.mulf %63, %54 : vector<8x128xf32>
    %65 = arith.addf %62, %64 : vector<8x128xf32>
    %66 = vector.broadcast %2 : f32 to vector<8x128xf32>
    %67 = arith.mulf %66, %57 : vector<8x128xf32>
    %68 = arith.addf %65, %67 : vector<8x128xf32>
    %69 = vector.broadcast %3 : f32 to vector<8x128xf32>
    %70 = arith.mulf %69, %60 : vector<8x128xf32>
    %71 = arith.addf %68, %70 : vector<8x128xf32>
    %72 = vector.broadcast %20 : f32 to vector<8x128xf32>
    %73 = arith.addf %71, %72 : vector<8x128xf32>
    %cst = arith.constant 0.000000e+00 : f32
    %74 = vector.broadcast %cst : f32 to vector<8x128xf32>
    %75 = arith.maximumf %73, %74 : vector<8x128xf32>
    %76 = vector.broadcast %4 : f32 to vector<8x128xf32>
    %77 = arith.mulf %76, %51 : vector<8x128xf32>
    %78 = vector.broadcast %5 : f32 to vector<8x128xf32>
    %79 = arith.mulf %78, %54 : vector<8x128xf32>
    %80 = arith.addf %77, %79 : vector<8x128xf32>
    %81 = vector.broadcast %6 : f32 to vector<8x128xf32>
    %82 = arith.mulf %81, %57 : vector<8x128xf32>
    %83 = arith.addf %80, %82 : vector<8x128xf32>
    %84 = vector.broadcast %7 : f32 to vector<8x128xf32>
    %85 = arith.mulf %84, %60 : vector<8x128xf32>
    %86 = arith.addf %83, %85 : vector<8x128xf32>
    %87 = vector.broadcast %21 : f32 to vector<8x128xf32>
    %88 = arith.addf %86, %87 : vector<8x128xf32>
    %cst_8 = arith.constant 0.000000e+00 : f32
    %89 = vector.broadcast %cst_8 : f32 to vector<8x128xf32>
    %90 = arith.maximumf %88, %89 : vector<8x128xf32>
    %91 = vector.broadcast %8 : f32 to vector<8x128xf32>
    %92 = arith.mulf %91, %51 : vector<8x128xf32>
    %93 = vector.broadcast %9 : f32 to vector<8x128xf32>
    %94 = arith.mulf %93, %54 : vector<8x128xf32>
    %95 = arith.addf %92, %94 : vector<8x128xf32>
    %96 = vector.broadcast %10 : f32 to vector<8x128xf32>
    %97 = arith.mulf %96, %57 : vector<8x128xf32>
    %98 = arith.addf %95, %97 : vector<8x128xf32>
    %99 = vector.broadcast %11 : f32 to vector<8x128xf32>
    %100 = arith.mulf %99, %60 : vector<8x128xf32>
    %101 = arith.addf %98, %100 : vector<8x128xf32>
    %102 = vector.broadcast %22 : f32 to vector<8x128xf32>
    %103 = arith.addf %101, %102 : vector<8x128xf32>
    %cst_9 = arith.constant 0.000000e+00 : f32
    %104 = vector.broadcast %cst_9 : f32 to vector<8x128xf32>
    %105 = arith.maximumf %103, %104 : vector<8x128xf32>
    %106 = vector.broadcast %12 : f32 to vector<8x128xf32>
    %107 = arith.mulf %106, %51 : vector<8x128xf32>
    %108 = vector.broadcast %13 : f32 to vector<8x128xf32>
    %109 = arith.mulf %108, %54 : vector<8x128xf32>
    %110 = arith.addf %107, %109 : vector<8x128xf32>
    %111 = vector.broadcast %14 : f32 to vector<8x128xf32>
    %112 = arith.mulf %111, %57 : vector<8x128xf32>
    %113 = arith.addf %110, %112 : vector<8x128xf32>
    %114 = vector.broadcast %15 : f32 to vector<8x128xf32>
    %115 = arith.mulf %114, %60 : vector<8x128xf32>
    %116 = arith.addf %113, %115 : vector<8x128xf32>
    %117 = vector.broadcast %23 : f32 to vector<8x128xf32>
    %118 = arith.addf %116, %117 : vector<8x128xf32>
    %cst_10 = arith.constant 0.000000e+00 : f32
    %119 = vector.broadcast %cst_10 : f32 to vector<8x128xf32>
    %120 = arith.maximumf %118, %119 : vector<8x128xf32>
    %121 = vector.broadcast %16 : f32 to vector<8x128xf32>
    %122 = arith.mulf %121, %51 : vector<8x128xf32>
    %123 = vector.broadcast %17 : f32 to vector<8x128xf32>
    %124 = arith.mulf %123, %54 : vector<8x128xf32>
    %125 = arith.addf %122, %124 : vector<8x128xf32>
    %126 = vector.broadcast %18 : f32 to vector<8x128xf32>
    %127 = arith.mulf %126, %57 : vector<8x128xf32>
    %128 = arith.addf %125, %127 : vector<8x128xf32>
    %129 = vector.broadcast %19 : f32 to vector<8x128xf32>
    %130 = arith.mulf %129, %60 : vector<8x128xf32>
    %131 = arith.addf %128, %130 : vector<8x128xf32>
    %132 = vector.broadcast %24 : f32 to vector<8x128xf32>
    %133 = arith.addf %131, %132 : vector<8x128xf32>
    %cst_11 = arith.constant 0.000000e+00 : f32
    %134 = vector.broadcast %cst_11 : f32 to vector<8x128xf32>
    %135 = arith.maximumf %133, %134 : vector<8x128xf32>
    %136 = vector.broadcast %25 : f32 to vector<8x128xf32>
    %137 = arith.mulf %136, %75 : vector<8x128xf32>
    %138 = vector.broadcast %26 : f32 to vector<8x128xf32>
    %139 = arith.mulf %138, %90 : vector<8x128xf32>
    %140 = arith.addf %137, %139 : vector<8x128xf32>
    %141 = vector.broadcast %27 : f32 to vector<8x128xf32>
    %142 = arith.mulf %141, %105 : vector<8x128xf32>
    %143 = arith.addf %140, %142 : vector<8x128xf32>
    %144 = vector.broadcast %28 : f32 to vector<8x128xf32>
    %145 = arith.mulf %144, %120 : vector<8x128xf32>
    %146 = arith.addf %143, %145 : vector<8x128xf32>
    %147 = vector.broadcast %29 : f32 to vector<8x128xf32>
    %148 = arith.mulf %147, %135 : vector<8x128xf32>
    %149 = arith.addf %146, %148 : vector<8x128xf32>
    %150 = vector.broadcast %40 : f32 to vector<8x128xf32>
    %151 = arith.addf %149, %150 : vector<8x128xf32>
    %cst_12 = arith.constant 5.000000e-01 : f32
    %152 = vector.broadcast %cst_12 : f32 to vector<8x128xf32>
    %153 = arith.mulf %152, %151 : vector<8x128xf32>
    %154 = math.tanh %153 : vector<8x128xf32>
    %cst_13 = arith.constant 5.000000e-01 : f32
    %155 = vector.broadcast %cst_13 : f32 to vector<8x128xf32>
    %156 = arith.mulf %155, %154 : vector<8x128xf32>
    %cst_14 = arith.constant 5.000000e-01 : f32
    %157 = vector.broadcast %cst_14 : f32 to vector<8x128xf32>
    %158 = arith.addf %156, %157 : vector<8x128xf32>
    %159 = vector.broadcast %30 : f32 to vector<8x128xf32>
    %160 = arith.mulf %159, %75 : vector<8x128xf32>
    %161 = vector.broadcast %31 : f32 to vector<8x128xf32>
    %162 = arith.mulf %161, %90 : vector<8x128xf32>
    %163 = arith.addf %160, %162 : vector<8x128xf32>
    %164 = vector.broadcast %32 : f32 to vector<8x128xf32>
    %165 = arith.mulf %164, %105 : vector<8x128xf32>
    %166 = arith.addf %163, %165 : vector<8x128xf32>
    %167 = vector.broadcast %33 : f32 to vector<8x128xf32>
    %168 = arith.mulf %167, %120 : vector<8x128xf32>
    %169 = arith.addf %166, %168 : vector<8x128xf32>
    %170 = vector.broadcast %34 : f32 to vector<8x128xf32>
    %171 = arith.mulf %170, %135 : vector<8x128xf32>
    %172 = arith.addf %169, %171 : vector<8x128xf32>
    %173 = vector.broadcast %41 : f32 to vector<8x128xf32>
    %174 = arith.addf %172, %173 : vector<8x128xf32>
    %cst_15 = arith.constant 5.000000e-01 : f32
    %175 = vector.broadcast %cst_15 : f32 to vector<8x128xf32>
    %176 = arith.mulf %175, %174 : vector<8x128xf32>
    %177 = math.tanh %176 : vector<8x128xf32>
    %cst_16 = arith.constant 5.000000e-01 : f32
    %178 = vector.broadcast %cst_16 : f32 to vector<8x128xf32>
    %179 = arith.mulf %178, %177 : vector<8x128xf32>
    %cst_17 = arith.constant 5.000000e-01 : f32
    %180 = vector.broadcast %cst_17 : f32 to vector<8x128xf32>
    %181 = arith.addf %179, %180 : vector<8x128xf32>
    %182 = vector.broadcast %35 : f32 to vector<8x128xf32>
    %183 = arith.mulf %182, %75 : vector<8x128xf32>
    %184 = vector.broadcast %36 : f32 to vector<8x128xf32>
    %185 = arith.mulf %184, %90 : vector<8x128xf32>
    %186 = arith.addf %183, %185 : vector<8x128xf32>
    %187 = vector.broadcast %37 : f32 to vector<8x128xf32>
    %188 = arith.mulf %187, %105 : vector<8x128xf32>
    %189 = arith.addf %186, %188 : vector<8x128xf32>
    %190 = vector.broadcast %38 : f32 to vector<8x128xf32>
    %191 = arith.mulf %190, %120 : vector<8x128xf32>
    %192 = arith.addf %189, %191 : vector<8x128xf32>
    %193 = vector.broadcast %39 : f32 to vector<8x128xf32>
    %194 = arith.mulf %193, %135 : vector<8x128xf32>
    %195 = arith.addf %192, %194 : vector<8x128xf32>
    %196 = vector.broadcast %42 : f32 to vector<8x128xf32>
    %197 = arith.addf %195, %196 : vector<8x128xf32>
    %cst_18 = arith.constant 5.000000e-01 : f32
    %198 = vector.broadcast %cst_18 : f32 to vector<8x128xf32>
    %199 = arith.mulf %198, %197 : vector<8x128xf32>
    %200 = math.tanh %199 : vector<8x128xf32>
    %cst_19 = arith.constant 5.000000e-01 : f32
    %201 = vector.broadcast %cst_19 : f32 to vector<8x128xf32>
    %202 = arith.mulf %201, %200 : vector<8x128xf32>
    %cst_20 = arith.constant 5.000000e-01 : f32
    %203 = vector.broadcast %cst_20 : f32 to vector<8x128xf32>
    %204 = arith.addf %202, %203 : vector<8x128xf32>
    %205 = vector.broadcast %43 : f32 to vector<8x128xf32>
    %206 = arith.mulf %205, %158 : vector<8x128xf32>
    %207 = vector.broadcast %44 : f32 to vector<8x128xf32>
    %208 = arith.mulf %207, %181 : vector<8x128xf32>
    %209 = arith.addf %206, %208 : vector<8x128xf32>
    %210 = vector.broadcast %45 : f32 to vector<8x128xf32>
    %211 = arith.mulf %210, %204 : vector<8x128xf32>
    %212 = arith.addf %209, %211 : vector<8x128xf32>
    %213 = vector.broadcast %46 : f32 to vector<8x128xf32>
    %214 = arith.addf %212, %213 : vector<8x128xf32>
    %cst_21 = arith.constant 5.000000e-01 : f32
    %215 = vector.broadcast %cst_21 : f32 to vector<8x128xf32>
    %216 = arith.mulf %215, %214 : vector<8x128xf32>
    %217 = math.tanh %216 : vector<8x128xf32>
    %cst_22 = arith.constant 5.000000e-01 : f32
    %218 = vector.broadcast %cst_22 : f32 to vector<8x128xf32>
    %219 = arith.mulf %218, %217 : vector<8x128xf32>
    %cst_23 = arith.constant 5.000000e-01 : f32
    %220 = vector.broadcast %cst_23 : f32 to vector<8x128xf32>
    %221 = arith.addf %219, %220 : vector<8x128xf32>
    %c0_24 = arith.constant 0 : index
    %222 = arith.index_cast %48 : i32 to index
    %223 = vector.load %arg3[%c0_24, %222] : memref<8x128xf32, #tpu.memory_space<vmem>>, vector<8x128xf32>
    tpu.vector_store %arg3[%c0_24, %222], %221 {strides = array<i32>} : memref<8x128xf32, #tpu.memory_space<vmem>>, vector<8x128xf32>,
    %c1_i32 = arith.constant 1 : i32
    return
  }
  func.func @transform_0(%arg0: i32) -> i32 {
    %c0_i32 = arith.constant 0 : i32
    %c0_i32_0 = arith.constant 0 : i32
    return %c0_i32 : i32
  }
  func.func @transform_1(%arg0: i32) -> (i32, i32, i32) {
    %c0_i32 = arith.constant 0 : i32
    %c0_i32_0 = arith.constant 0 : i32
    %c0_i32_1 = arith.constant 0 : i32
    return %c0_i32, %arg0, %c0_i32_0 : i32, i32, i32
  }
  func.func @transform_2(%arg0: i32) -> (i32, i32) {
    %c0_i32 = arith.constant 0 : i32
    %c0_i32_0 = arith.constant 0 : i32
    return %arg0, %c0_i32 : i32, i32
  }
}

</mosaic_0001>

<bundles_post_ra>
// kernel: tpu_custom_call.1
= control target key start
LH: loop header
LB: loop body
LE: loop exit
PB: predicated region body
PF: predicated region fallthrough
CT: control target
= control target key end

     0   :  { %7 = vsyncpa [#allocation5], 0  ;;  %s569_s0 = inlined_call_operand.hbm [shape: f32[64], index: 0, kind: input, shape index: {}]   ;;  %s570_s1 = inlined_call_operand.hbm [shape: f32[4,8,128], index: 1, kind: input, shape index: {}]   ;;  %s571_s2 = inlined_call_operand.hbm [shape: f32[8,128], index: 2, kind: output, shape index: {}]  }
   0x1   :  { %8 = vsyncpa [#allocation3], 0 }
   0x2   :  { %9 = vsyncpa [#allocation4], 0  ;;  %s317_s11 = scalar_lea.hbm %s569_s0, 16 }
   0x3   :  { %p318_p0 = scmp.ne.s32.totalorder %s569_s0, %s317_s11  ;;  %p321_p1 = scmp.lt.u32.totalorder %s317_s11, %s569_s0 }
   0x5   :  { %p323_p2 = pnand %p321_p1, %p318_p0 }
   0x7   :  { %326 = shalt.err (!%p323_p2)
}
   0x8   :  { %s377_s16 = smov [#allocation2]   ;;  %s378_s19 = smov [#allocation6]  }
   0x9   :  { %17 = dma.hbm_to_smem %s569_s0, 16, %s377_s16, [#allocation5]  }
   0xa   :  { %s23_s20 = sshll.u32 %s378_s19, 4  ;;  %s327_s23 = scalar_lea.hbm %s570_s1, 512  ;;  %s24_s20 = int_to_ptr.vmem [resolvable:$true] %s23_s20 }
   0xb   :  { %p328_p3 = scmp.ne.s32.totalorder %s570_s1, %s327_s23  ;;  %p331_p4 = scmp.lt.u32.totalorder %s327_s23, %s570_s1 }
   0xd   :  { %p333_p5 = pnand %p331_p4, %p328_p3 }
   0xf   :  { %336 = shalt.err (!%p333_p5)
}
  0x10   :  { %s337_s28 = scalar_lea.vmem %s24_s20, 512  ;;  %p342_p7 = scmp.lt.s32.totalorder %s24_s20, %s24_s20 }
  0x11   :  { %p338_p6 = scmp.ne.s32.totalorder %s24_s20, %s337_s28  ;;  %p343_p8 = scmp.lt.s32.totalorder %s337_s28, %s337_s28 }
  0x13   :  { %p344_p9 = por %p343_p8, %p342_p7 }
  0x15   :  { %p345_p10 = pnand %p344_p9, %p338_p6 }
  0x17   :  { %348 = shalt.err (!%p345_p10)
}
  0x18   :  { %s379_s0 = smov 128   ;;  %s380_s29 = smov 8  }
  0x19   :  { %29 = dma.hbm_to_vmem [thread:$0]  %s570_s1, 512, %s24_s20, [#allocation3], %s379_s0, %s379_s0, %s380_s29  }
  0x1a   :  { %371 = dma.done.wait [#allocation5], 16  }
  0x1b   :  { %372 = vsyncadd [#allocation5], 4294967280 }
  0x1c   :  { %373 = dma.done.wait [#allocation3], 512  }
  0x1d   :  { %374 = vsyncadd [#allocation3], 4294966784 }
  0x1e   :  { %36 = sfence }
  0x1f   :  { %s37_s4 = sld [smem:[#allocation2]]  ;;  %s258_s5 = sld [smem:[#allocation2 + $0x1]]  ;;  %v429_v0 = vld [vmem:[#allocation6] sm:$0xff]  ;;  %v431_v1 = vld [vmem:[#allocation6 + $0x8] sm:$0xff]  ;;  %v437_v2 = vld [vmem:[#allocation6 + $0x10] sm:$0xff] }
  0x20   :  { %s259_s6 = sld [smem:[#allocation2 + $0x2]]  ;;  %s260_s7 = sld [smem:[#allocation2 + $0x3]]  ;;  %v439_v3 = vld [vmem:[#allocation6 + $0x18] sm:$0xff] }
  0x21   :  { %s261_s8 = sld [smem:[#allocation2 + $0x4]]  ;;  %s262_s9 = sld [smem:[#allocation2 + $0x5]] }
  0x22   :  { %s421_s10 = sld [smem:[#allocation2 + $0x6]]  ;;  %s423_s11 = sld [smem:[#allocation2 + $0x7]] }
  0x23   :  { %s425_s12 = sld [smem:[#allocation2 + $0x8]]  ;;  %s427_s13 = sld [smem:[#allocation2 + $0x9]] }
  0x24   :  { %s433_s1 = sld [smem:[#allocation2 + $0xa]]  ;;  %s435_s14 = sld [smem:[#allocation2 + $0xb]] }
  0x25   :  { %s441_s15 = sld [smem:[#allocation2 + $0xc]]  ;;  %s443_s16 = sld [smem:[#allocation2 + $0xd]]  ;;  %v94_v4 = vstv %s37_s4  ;;  %v96_v5 = vstv %s258_s5 }
  0x26   :  { %s445_s17 = sld [smem:[#allocation2 + $0xe]]  ;;  %s447_s18 = sld [smem:[#allocation2 + $0xf]]  ;;  %v95_v6 = vmul.f32 %v94_v4, %v429_v0  ;;  %v97_v7 = vmul.f32 %v96_v5, %v431_v1  ;;  %v99_v8 = vstv %s259_s6  ;;  %v102_v9 = vstv %s260_s7 }
  0x27   :  { %v100_v10 = vmul.f32 %v99_v8, %v437_v2  ;;  %v103_v11 = vmul.f32 %v102_v9, %v439_v3  ;;  %v108_v12 = vstv %s261_s8  ;;  %v110_v13 = vstv %s262_s9  ;;  %s453_s19 = sld [smem:[#allocation2 + $0x10]]  ;;  %s455_s20 = sld [smem:[#allocation2 + $0x11]] }
  0x28   :  { %v98_v14 = vadd.f32 %v97_v7, %v95_v6  ;;  %v109_v15 = vmul.f32 %v108_v12, %v429_v0  ;;  %v111_v16 = vmul.f32 %v110_v13, %v431_v1  ;;  %v113_v17 = vstv %s421_s10  ;;  %s460_s21 = sld [smem:[#allocation2 + $0x14]]  ;;  %s462_s22 = sld [smem:[#allocation2 + $0x15]] }
  0x29   :  { %v114_v18 = vmul.f32 %v113_v17, %v437_v2  ;;  %v116_v19 = vstv %s423_s11  ;;  %v122_v20 = vstv %s425_s12  ;;  %v124_v21 = vstv %s427_s13  ;;  %s468_s23 = sld [smem:[#allocation2 + $0x16]]  ;;  %s470_s24 = sld [smem:[#allocation2 + $0x17]] }
  0x2a   :  { %v101_v22 = vadd.f32 %v100_v10, %v98_v14  ;;  %v112_v23 = vadd.f32 %v111_v16, %v109_v15  ;;  %v117_v24 = vmul.f32 %v116_v19, %v439_v3  ;;  %v123_v25 = vmul.f32 %v122_v20, %v429_v0  ;;  %s474_s25 = sld [smem:[#allocation2 + $0x12]]  ;;  %s476_s26 = sld [smem:[#allocation2 + $0x13]] }
  0x2b   :  { %v125_v26 = vmul.f32 %v124_v21, %v431_v1  ;;  %v127_v27 = vstv %s433_s1  ;;  %v130_v28 = vstv %s435_s14  ;;  %v136_v29 = vstv %s441_s15  ;;  %s484_s27 = sld [smem:[#allocation2 + $0x19]]  ;;  %s486_s28 = sld [smem:[#allocation2 + $0x1a]] }
  0x2c   :  { %v104_v30 = vadd.f32 %v103_v11, %v101_v22  ;;  %v115_v31 = vadd.f32 %v114_v18, %v112_v23  ;;  %v128_v32 = vmul.f32 %v127_v27, %v437_v2  ;;  %v131_v33 = vmul.f32 %v130_v28, %v439_v3  ;;  %s491_s0 = sld [smem:[#allocation2 + $0x1b]]  ;;  %s496_s29 = sld [smem:[#allocation2 + $0x18]] }
  0x2d   :  { %v126_v34 = vadd.f32 %v125_v26, %v123_v25  ;;  %v137_v35 = vmul.f32 %v136_v29, %v429_v0  ;;  %v138_v36 = vstv %s443_s16  ;;  %v141_v37 = vstv %s445_s17  ;;  %s498_s30 = sld [smem:[#allocation2 + $0x1c]]  ;;  %s503_s3 = sld [smem:[#allocation2 + $0x1e]] }
  0x2e   :  { %v118_v38 = vadd.f32 %v117_v24, %v115_v31  ;;  %v139_v39 = vmul.f32 %v138_v36, %v431_v1  ;;  %v142_v40 = vmul.f32 %v141_v37, %v437_v2  ;;  %v144_v41 = vstv %s447_s18  ;;  %s505_s4 = sld [smem:[#allocation2 + $0x1f]]  ;;  %s511_s5 = sld [smem:[#allocation2 + $0x20]] }
  0x2f   :  { %v105_v42 = vstv %s460_s21  ;;  %v119_v43 = vstv %s462_s22  ;;  %v129_v44 = vadd.f32 %v128_v32, %v126_v34  ;;  %v145_v45 = vmul.f32 %v144_v41, %v439_v3  ;;  %s513_s6 = sld [smem:[#allocation2 + $0x21]]  ;;  %s516_s7 = sld [smem:[#allocation2 + $0x1d]] }
  0x30   :  { %v106_v46 = vadd.f32 %v105_v42, %v104_v30  ;;  %v120_v47 = vadd.f32 %v119_v43, %v118_v38  ;;  %v133_v48 = vstv %s468_s23  ;;  %v140_v49 = vadd.f32 %v139_v39, %v137_v35  ;;  %s521_s8 = sld [smem:[#allocation2 + $0x22]]  ;;  %s523_s9 = sld [smem:[#allocation2 + $0x23]] }
  0x31   :  { %v132_v50 = vadd.f32 %v131_v33, %v129_v44  ;;  %v147_v51 = vstv %s470_s24  ;;  %v150_v52 = vstv %s453_s19  ;;  %v152_v53 = vstv %s455_s20  ;;  %s527_s10 = sld [smem:[#allocation2 + $0x24]]  ;;  %s529_s11 = sld [smem:[#allocation2 + $0x25]] }
  0x32   :  { %v107_v54 = vmax.f32 %v106_v46, 0.0  ;;  %v121_v55 = vmax.f32 %v120_v47, 0.0  ;;  %v143_v56 = vadd.f32 %v142_v40, %v140_v49  ;;  %v151_v57 = vmul.f32 %v150_v52, %v429_v0  ;;  %s533_s12 = sld [smem:[#allocation2 + $0x26]]  ;;  %s535_s13 = sld [smem:[#allocation2 + $0x27]] }
  0x33   :  { %v134_v58 = vadd.f32 %v133_v48, %v132_v50  ;;  %v153_v59 = vmul.f32 %v152_v53, %v431_v1  ;;  %v155_v60 = vstv %s474_s25  ;;  %v158_v61 = vstv %s476_s26  ;;  %s540_s1 = sld [smem:[#allocation2 + $0x28]]  ;;  %s542_s14 = sld [smem:[#allocation2 + $0x29]] }
  0x34   :  { %v146_v62 = vadd.f32 %v145_v45, %v143_v56  ;;  %v156_v63 = vmul.f32 %v155_v60, %v437_v2  ;;  %v159_v4 = vmul.f32 %v158_v61, %v439_v3  ;;  %v164_v5 = vstv %s484_s27  ;;  %s299_s15 = sld [smem:[#allocation2 + $0x2a]]  ;;  %s300_s16 = sld [smem:[#allocation2 + $0x2b]] }
  0x35   :  { %v135_v0 = vmax.f32 %v134_v58, 0.0  ;;  %v154_v1 = vadd.f32 %v153_v59, %v151_v57  ;;  %v166_v6 = vstv %s486_s28  ;;  %v165_v8 = vmul.f32 %v164_v5, %v107_v54  ;;  %s301_s17 = sld [smem:[#allocation2 + $0x2c]]  ;;  %s302_s18 = sld [smem:[#allocation2 + $0x2d]] }
  0x36   :  { %v148_v7 = vadd.f32 %v147_v51, %v146_v62  ;;  %v167_v2 = vmul.f32 %v166_v6, %v121_v55  ;;  %v169_v9 = vstv %s491_s0  ;;  %v161_v10 = vstv %s496_s29  ;;  %s303_s19 = sld [smem:[#allocation2 + $0x2e]]  ;;  %s381_s20 = smov [#allocation7]  }
  0x37   :  { %v157_v3 = vadd.f32 %v156_v63, %v154_v1  ;;  %v170_v11 = vmul.f32 %v169_v9, %v135_v0  ;;  %v172_v12 = vstv %s498_s30  ;;  %v184_v15 = vstv %s503_s3  ;;  %s245_s21 = sshll.u32 %s381_s20, 4  ;;  %s246_s21 = int_to_ptr.vmem [resolvable:$true] %s245_s21 }
  0x38   :  { %v149_v13 = vmax.f32 %v148_v7, 0.0  ;;  %v168_v14 = vadd.f32 %v167_v2, %v165_v8  ;;  %v186_v16 = vstv %s505_s4  ;;  %v185_v18 = vmul.f32 %v184_v15, %v107_v54  ;;  %s349_s22 = scalar_lea.vmem %s246_s21, 128  ;;  %p354_p12 = scmp.lt.s32.totalorder %s246_s21, %s246_s21 }
  0x39   :  { %v160_v17 = vadd.f32 %v159_v4, %v157_v3  ;;  %v187_v19 = vmul.f32 %v186_v16, %v121_v55  ;;  %v189_v22 = vstv %s511_s5  ;;  %v192_v23 = vstv %s513_s6  ;;  %p350_p11 = scmp.ne.s32.totalorder %s246_s21, %s349_s22  ;;  %p355_p13 = scmp.lt.s32.totalorder %s349_s22, %s349_s22 }
  0x3a   :  { %v171_v20 = vadd.f32 %v170_v11, %v168_v14  ;;  %v173_v21 = vmul.f32 %v172_v12, %v149_v13  ;;  %v190_v26 = vmul.f32 %v189_v22, %v135_v0  ;;  %v193_v27 = vmul.f32 %v192_v23, %v149_v13 }
  0x3b   :  { %v162_v24 = vadd.f32 %v161_v10, %v160_v17  ;;  %v188_v25 = vadd.f32 %v187_v19, %v185_v18  ;;  %v175_v29 = vstv %s516_s7  ;;  %v195_v30 = vstv %s521_s8  ;;  %p356_p0 = por %p355_p13, %p354_p12 }
  0x3c   :  { %v174_v28 = vadd.f32 %v173_v21, %v171_v20  ;;  %v204_v31 = vstv %s523_s9  ;;  %v206_v35 = vstv %s527_s10  ;;  %v209_v37 = vstv %s529_s11 }
  0x3d   :  { %v163_v32 = vmax.f32 %v162_v24, 0.0  ;;  %v191_v33 = vadd.f32 %v190_v26, %v188_v25  ;;  %v205_v34 = vmul.f32 %v204_v31, %v107_v54  ;;  %v207_v36 = vmul.f32 %v206_v35, %v121_v55  ;;  %p357_p1 = pnand %p356_p0, %p350_p11 }
  0x3e   :  { %v212_v38 = vstv %s533_s12  ;;  %v215_v39 = vstv %s535_s13  ;;  %v210_v43 = vmul.f32 %v209_v37, %v135_v0  ;;  %v178_v44 = vstv %s540_s1 }
  0x3f   :  { %v176_v40 = vmul.f32 %v175_v29, %v163_v32  ;;  %v194_v41 = vadd.f32 %v193_v27, %v191_v33  ;;  %v196_v42 = vmul.f32 %v195_v30, %v163_v32  ;;  %v198_v45 = vstv %s542_s14 }
  0x40   :  { %v208_v46 = vadd.f32 %v207_v36, %v205_v34  ;;  %v213_v47 = vmul.f32 %v212_v38, %v149_v13  ;;  %v216_v51 = vmul.f32 %v215_v39, %v163_v32  ;;  %v218_v57 = vstv %s299_s15 }
  0x41   :  { %v177_v48 = vadd.f32 %v176_v40, %v174_v28  ;;  %v197_v49 = vadd.f32 %v196_v42, %v194_v41  ;;  %v224_v0 = vstv %s300_s16  ;;  %v226_v5 = vstv %s301_s17 }
  0x42   :  { %v211_v50 = vadd.f32 %v210_v43, %v208_v46  ;;  %v229_v3 = vstv %s302_s18  ;;  %v232_v13 = vstv %s303_s19 }
  0x43   :  { %v179_v52 = vadd.f32 %v178_v44, %v177_v48  ;;  %v199_v53 = vadd.f32 %v198_v45, %v197_v49 }
  0x44   :  { %v214_v54 = vadd.f32 %v213_v47, %v211_v50 }
  0x45   :  { %v180_v56 = vmul.f32 0.5, %v179_v52  ;;  %v200_v55 = vmul.f32 0.5, %v199_v53 }
  0x46   :  { %v217_v58 = vadd.f32 %v216_v51, %v214_v54 }
  0x47   :  { %309 = vtanh.f32 %v180_v56 }
  0x48   :  { %311 = vtanh.f32 %v200_v55  ;;  %v219_v59 = vadd.f32 %v218_v57, %v217_v58 }
  0x4a   :  { %v220_v60 = vmul.f32 0.5, %v219_v59 }
  0x4c   :  { %313 = vtanh.f32 %v220_v60 }
  0x51   :  { %v310_v61 = vpop.eup %309 }
  0x52   :  { %v312_v62 = vpop.eup %311  ;;  %v182_v63 = vmul.f32 0.5, %v310_v61 }
  0x53   :  { %v202_v4 = vmul.f32 0.5, %v312_v62 }
  0x54   :  { %v183_v1 = vadd.f32 0.5, %v182_v63 }
  0x55   :  { %v203_v6 = vadd.f32 0.5, %v202_v4 }
  0x56   :  { %v314_v7 = vpop.eup %313  ;;  %v225_v8 = vmul.f32 %v224_v0, %v183_v1 }
  0x57   :  { %v222_v2 = vmul.f32 0.5, %v314_v7  ;;  %v227_v9 = vmul.f32 %v226_v5, %v203_v6 }
  0x59   :  { %v223_v10 = vadd.f32 0.5, %v222_v2  ;;  %v228_v11 = vadd.f32 %v227_v9, %v225_v8 }
  0x5b   :  { %v230_v12 = vmul.f32 %v229_v3, %v223_v10 }
  0x5d   :  { %v231_v14 = vadd.f32 %v230_v12, %v228_v11 }
  0x5f   :  { %v233_v15 = vadd.f32 %v232_v13, %v231_v14 }
  0x61   :  { %v234_v16 = vmul.f32 0.5, %v233_v15 }
  0x63   :  { %315 = vtanh.f32 %v234_v16 }
  0x6d   :  { %v316_v17 = vpop.eup %315 }
  0x6e   :  { %v236_v18 = vmul.f32 0.5, %v316_v17 }
  0x70   :  { %v237_v19 = vadd.f32 0.5, %v236_v18 }
  0x72   :  { %238 = vst [vmem:[#allocation7] sm:$0xff] %v237_v19 }
  0x73   :  { %360 = shalt.err (!%p357_p1)
}
  0x74   :  { %s361_s25 = scalar_lea.hbm %s571_s2, 128 }
  0x75   :  { %p362_p2 = scmp.ne.s32.totalorder %s571_s2, %s361_s25  ;;  %p365_p3 = scmp.lt.u32.totalorder %s361_s25, %s571_s2 }
  0x77   :  { %p367_p4 = pnand %p365_p3, %p362_p2 }
  0x79   :  { %370 = shalt.err (!%p367_p4)
}
  0x7a   :  { %248 = dma.vmem_to_hbm [thread:$0]  %s246_s21, 128, %s571_s2, [#allocation4]  }
  0x7b   :  { %375 = dma.done.wait [#allocation4], 128  }
  0x7c   :  { %376 = vsyncadd [#allocation4], 4294967168 }
  0x7d   :  { %252 = vsyncpa [#allocation3], 1 }
  0x7e   :  { %253 = vsyncpa [#allocation4], 1 }
  0x7f   :  { %254 = vsyncpa [#allocation5], 1 }

</bundles_post_ra>
